<compile_context>
chip_gen: v6e
topology: v6e:2x2x1
jax: 0.10.0
libtpu: 0.0.40
codegen_flags: <defaults>
</compile_context>

<pallas_src>
import jax
import jax.numpy as jnp
from jax.experimental import pallas as pl
from jax.experimental.pallas import tpu as pltpu

# ---- small, self-consistent shapes (consistent with the ViT context) --------
B = 2          # batch
N = 8          # sequence length (num patches)
DIM = 32       # model dim
HIDDEN = 64    # hidden_dim (mlp_dim)
ROWS = B * N   # 16 rows processed in a single invocation


def _gelu_exact(x):
    # PyTorch nn.GELU() default: exact erf formulation.
    return 0.5 * x * (1.0 + jax.lax.erf(x * (1.0 / jnp.sqrt(2.0)).astype(x.dtype)))


# ---- Pallas kernel: fused Linear -> GELU -> Linear ---------------------------
def ffn_kernel(x_ref, w1_ref, b1_ref, w2_ref, b2_ref, o_ref):
    x = x_ref[...]                                                   # (ROWS, DIM)
    h = jnp.dot(x, w1_ref[...], preferred_element_type=jnp.float32) + b1_ref[...]
    h = _gelu_exact(h)                                               # (ROWS, HIDDEN)
    # Dropout(p=0.0) == identity -> omitted.
    y = jnp.dot(h, w2_ref[...], preferred_element_type=jnp.float32) + b2_ref[...]
    o_ref[...] = y                                                   # (ROWS, DIM)


# ---- wrapper -----------------------------------------------------------------
def feedforward(x, params):
    w1, b1, w2, b2 = params
    b, n, d = x.shape
    rows = b * n
    x2 = x.reshape(rows, d)  # flatten batch/seq in the wrapper -> bigger matmul M

    grid_spec = pltpu.PrefetchScalarGridSpec(
        num_scalar_prefetch=0,
        grid=(1,),                                   # single program, no batch grid
        in_specs=[pl.BlockSpec((rows, d), lambda i: (0, 0)),
                  pl.BlockSpec(w1.shape, lambda i: (0, 0)),
                  pl.BlockSpec(b1.shape, lambda i: (0, 0)),
                  pl.BlockSpec(w2.shape, lambda i: (0, 0)),
                  pl.BlockSpec(b2.shape, lambda i: (0, 0))],
        out_specs=pl.BlockSpec((rows, d), lambda i: (0, 0)),
    )
    out = pl.pallas_call(
        ffn_kernel,
        out_shape=jax.ShapeDtypeStruct((rows, d), jnp.float32),
        grid_spec=grid_spec,
        compiler_params=pltpu.CompilerParams(
            dimension_semantics=("arbitrary",)),
    )(x2, w1, b1, w2, b2)
    return out.reshape(b, n, d)


# ---- pure-JAX reference (for correctness check) ------------------------------
def feedforward_ref(x, params):
    w1, b1, w2, b2 = params
    h = _gelu_exact(x @ w1 + b1)
    return h @ w2 + b2


# ---- deterministic parameter construction ------------------------------------
def make_params(key):
    k1, k2, k3, k4 = jax.random.split(key, 4)
    nrm = lambda k, shape, s=0.05: (s * jax.random.normal(k, shape)).astype(jnp.float32)
    # Weights stored as (in_features, out_features): transpose of PyTorch's layout.
    w1 = nrm(k1, (DIM, HIDDEN))
    b1 = nrm(k2, (1, HIDDEN))
    w2 = nrm(k3, (HIDDEN, DIM))
    b2 = nrm(k4, (1, DIM))
    return (w1, b1, w2, b2)


if __name__ == "__main__":
    key = jax.random.PRNGKey(0)
    k_x, k_p = jax.random.split(key)
    x = jax.random.normal(k_x, (B, N, DIM), dtype=jnp.float32)
    params = make_params(k_p)

    out = jax.block_until_ready(feedforward(x, params))
    ref = jax.block_until_ready(feedforward_ref(x, params))

    assert out.shape == (B, N, DIM)
    assert jnp.allclose(out, ref, rtol=1e-4, atol=1e-4), (
        f"max abs diff {jnp.max(jnp.abs(out - ref))}")
    print("KERNEL_OK")
</pallas_src>

<mosaic_0001>
module attributes {stable_mosaic.version = 11 : i64} {
  func.func @ffn_kernel(%arg0: i32, %arg1: memref<16x32xf32, #tpu.memory_space<vmem>>, %arg2: memref<32x64xf32, #tpu.memory_space<vmem>>, %arg3: memref<1x64xf32, #tpu.memory_space<vmem>>, %arg4: memref<64x32xf32, #tpu.memory_space<vmem>>, %arg5: memref<1x32xf32, #tpu.memory_space<vmem>>, %arg6: memref<16x32xf32, #tpu.memory_space<vmem>>) attributes {dimension_semantics = [#tpu.dimension_semantics<arbitrary>], iteration_bounds = array<i64: 1>, scalar_prefetch = 0 : i64, scratch_operands = 0 : i64, tpu.core_type = #tpu.core_type<tc>, window_params = [{pipeline_mode = #tpu.pipeline_mode<synchronous>, transform_indices = @transform_0, window_bounds = array<i64: 16, 32>}, {pipeline_mode = #tpu.pipeline_mode<synchronous>, transform_indices = @transform_1, window_bounds = array<i64: 32, 64>}, {pipeline_mode = #tpu.pipeline_mode<synchronous>, transform_indices = @transform_2, window_bounds = array<i64: 1, 64>}, {pipeline_mode = #tpu.pipeline_mode<synchronous>, transform_indices = @transform_3, window_bounds = array<i64: 64, 32>}, {pipeline_mode = #tpu.pipeline_mode<synchronous>, transform_indices = @transform_4, window_bounds = array<i64: 1, 32>}, {pipeline_mode = #tpu.pipeline_mode<synchronous>, transform_indices = @transform_5, window_bounds = array<i64: 16, 32>}]} {
    %c0 = arith.constant 0 : index
    %c0_0 = arith.constant 0 : index
    %0 = vector.load %arg1[%c0, %c0_0] : memref<16x32xf32, #tpu.memory_space<vmem>>, vector<16x32xf32>
    %c0_1 = arith.constant 0 : index
    %c0_2 = arith.constant 0 : index
    %1 = vector.load %arg2[%c0_1, %c0_2] : memref<32x64xf32, #tpu.memory_space<vmem>>, vector<32x64xf32>
    %cst = arith.constant dense<0.000000e+00> : vector<16x64xf32>
    %2 = tpu.matmul %0, %1, %cst {dimension_numbers = #tpu.dot_dimension_numbers<[1], [0], [0], [1], [0, 0, 1, 1], [], []>} : vector<16x32xf32>, vector<32x64xf32>, vector<16x64xf32> -> vector<16x64xf32>
    %c0_3 = arith.constant 0 : index
    %c0_4 = arith.constant 0 : index
    %3 = vector.load %arg3[%c0_3, %c0_4] : memref<1x64xf32, #tpu.memory_space<vmem>>, vector<1x64xf32>
    %4 = vector.broadcast %3 : vector<1x64xf32> to vector<16x64xf32>
    %5 = arith.addf %2, %4 : vector<16x64xf32>
    %cst_5 = arith.constant 5.000000e-01 : f32
    %6 = vector.broadcast %cst_5 : f32 to vector<16x64xf32>
    %7 = arith.mulf %6, %5 : vector<16x64xf32>
    %cst_6 = arith.constant 2.000000e+00 : f32
    %8 = math.sqrt %cst_6 : f32
    %cst_7 = arith.constant 1.000000e+00 : f32
    %9 = arith.divf %cst_7, %8 : f32
    %10 = vector.broadcast %9 : f32 to vector<16x64xf32>
    %11 = arith.mulf %5, %10 : vector<16x64xf32>
    %12 = math.erf %11 : vector<16x64xf32>
    %cst_8 = arith.constant 1.000000e+00 : f32
    %13 = vector.broadcast %cst_8 : f32 to vector<16x64xf32>
    %14 = arith.addf %13, %12 : vector<16x64xf32>
    %15 = arith.mulf %7, %14 : vector<16x64xf32>
    %c0_9 = arith.constant 0 : index
    %c0_10 = arith.constant 0 : index
    %16 = vector.load %arg4[%c0_9, %c0_10] : memref<64x32xf32, #tpu.memory_space<vmem>>, vector<64x32xf32>
    %cst_11 = arith.constant dense<0.000000e+00> : vector<16x32xf32>
    %17 = tpu.matmul %15, %16, %cst_11 {dimension_numbers = #tpu.dot_dimension_numbers<[1], [0], [0], [1], [0, 0, 1, 1], [], []>} : vector<16x64xf32>, vector<64x32xf32>, vector<16x32xf32> -> vector<16x32xf32>
    %c0_12 = arith.constant 0 : index
    %c0_13 = arith.constant 0 : index
    %18 = vector.load %arg5[%c0_12, %c0_13] : memref<1x32xf32, #tpu.memory_space<vmem>>, vector<1x32xf32>
    %19 = vector.broadcast %18 : vector<1x32xf32> to vector<16x32xf32>
    %20 = arith.addf %17, %19 : vector<16x32xf32>
    %c0_14 = arith.constant 0 : index
    %c0_15 = arith.constant 0 : index
    %21 = vector.load %arg6[%c0_14, %c0_15] : memref<16x32xf32, #tpu.memory_space<vmem>>, vector<16x32xf32>
    tpu.vector_store %arg6[%c0_14, %c0_15], %20 {strides = array<i32>} : memref<16x32xf32, #tpu.memory_space<vmem>>, vector<16x32xf32>,
    return
  }
  func.func @transform_0(%arg0: i32) -> (i32, i32) {
    %c0_i32 = arith.constant 0 : i32
    %c0_i32_0 = arith.constant 0 : i32
    %c0_i32_1 = arith.constant 0 : i32
    return %c0_i32, %c0_i32_0 : i32, i32
  }
  func.func @transform_1(%arg0: i32) -> (i32, i32) {
    %c0_i32 = arith.constant 0 : i32
    %c0_i32_0 = arith.constant 0 : i32
    %c0_i32_1 = arith.constant 0 : i32
    return %c0_i32, %c0_i32_0 : i32, i32
  }
  func.func @transform_2(%arg0: i32) -> (i32, i32) {
    %c0_i32 = arith.constant 0 : i32
    %c0_i32_0 = arith.constant 0 : i32
    %c0_i32_1 = arith.constant 0 : i32
    return %c0_i32, %c0_i32_0 : i32, i32
  }
  func.func @transform_3(%arg0: i32) -> (i32, i32) {
    %c0_i32 = arith.constant 0 : i32
    %c0_i32_0 = arith.constant 0 : i32
    %c0_i32_1 = arith.constant 0 : i32
    return %c0_i32, %c0_i32_0 : i32, i32
  }
  func.func @transform_4(%arg0: i32) -> (i32, i32) {
    %c0_i32 = arith.constant 0 : i32
    %c0_i32_0 = arith.constant 0 : i32
    %c0_i32_1 = arith.constant 0 : i32
    return %c0_i32, %c0_i32_0 : i32, i32
  }
  func.func @transform_5(%arg0: i32) -> (i32, i32) {
    %c0_i32 = arith.constant 0 : i32
    %c0_i32_0 = arith.constant 0 : i32
    %c0_i32_1 = arith.constant 0 : i32
    return %c0_i32, %c0_i32_0 : i32, i32
  }
}

</mosaic_0001>

<bundles_post_ra>
// kernel: tpu_custom_call.1
= control target key start
LH: loop header
LB: loop body
LE: loop exit
PB: predicated region body
PF: predicated region fallthrough
CT: control target
= control target key end

     0   :  { %vm34_vm0 = vcmask 261120   ;;  %s410_s0 = inlined_call_operand.vmem [shape: f32[16,32], index: 0, kind: input, shape index: {}]   ;;  %s411_s1 = inlined_call_operand.vmem [shape: f32[32,64], index: 1, kind: input, shape index: {}]   ;;  %s412_s2 = inlined_call_operand.vmem [shape: f32[1,64], index: 2, kind: input, shape index: {}]   ;;  %s413_s3 = inlined_call_operand.vmem [shape: f32[64,32], index: 3, kind: input, shape index: {}]   ;;  %s414_s4 = inlined_call_operand.vmem [shape: f32[1,32], index: 4, kind: input, shape index: {}]   ;;  %s415_s5 = inlined_call_operand.hbm [shape: f32[16,32], index: 5, kind: output, shape index: {}]  }
   0x1   :  { %v26_v0 = vld [vmem:[%s411_s1 + $0x18] sm:$0xff]  ;;  %v25_v1 = vld [vmem:[%s411_s1 + $0x10] sm:$0xff]  ;;  %v21_v2 = vld [vmem:[%s410_s0] sm:$0xff] }
   0x2   :  { %263 = vmatprep.subr.mxu0 %v26_v0  ;;  %v24_v3 = vld [vmem:[%s411_s1 + $0x8] sm:$0xff]  ;;  %271 = vmatprep.mubr.msk.f32.mxu0 %vm34_vm0, %v21_v2 }
   0x3   :  { %264 = vmatpush3.msra.mxu0 %v26_v0 }
   0x4   :  { %10 = vsyncpa [#allocation3], 0  ;;  %265 = vmatprep.subr.mxu0 %v25_v1  ;;  %v23_v4 = vld [vmem:[%s411_s1] sm:$0xff]  ;;  %v22_v5 = vld [vmem:[%s410_s0 + $0x8] sm:$0xff]  ;;  %vm141_vm1 = vcmask 523264   ;;  %s322_s21 = smov [#allocation2]  }
   0x5   :  { %266 = vmatpush3.msra.mxu0 %v25_v1  ;;  %v133_v6 = vld [vmem:[%s413_s3 + $0x38] sm:$0xff]  ;;  %v132_v7 = vld [vmem:[%s413_s3 + $0x30] sm:$0xff]  ;;  %v131_v8 = vld [vmem:[%s413_s3 + $0x28] sm:$0xff]  ;;  %s230_s22 = sshll.u32 %s322_s21, 4  ;;  %s231_s22 = int_to_ptr.vmem [resolvable:$true] %s230_s22 }
   0x6   :  { %267 = vmatprep.subr.mxu0 %v24_v3  ;;  %274 = vmatprep.subr.mxu1 %v133_v6  ;;  %v130_v9 = vld [vmem:[%s413_s3 + $0x20] sm:$0xff]  ;;  %v129_v10 = vld [vmem:[%s413_s3 + $0x18] sm:$0xff]  ;;  %v128_v11 = vld [vmem:[%s413_s3 + $0x10] sm:$0xff]  ;;  %s300_s23 = scalar_lea.vmem %s231_s22, 256  ;;  %p305_p1 = scmp.lt.s32.totalorder %s231_s22, %s231_s22 }
   0x7   :  { %268 = vmatpush3.msra.mxu0 %v24_v3  ;;  %275 = vmatpush3.msra.mxu1 %v133_v6  ;;  %v127_v12 = vld [vmem:[%s413_s3 + $0x8] sm:$0xff]  ;;  %v126_v13 = vld [vmem:[%s413_s3] sm:$0xff]  ;;  %p301_p0 = scmp.ne.s32.totalorder %s231_s22, %s300_s23  ;;  %p306_p2 = scmp.lt.s32.totalorder %s300_s23, %s300_s23 }
   0x8   :  { %269 = vmatprep.subr.mxu0 %v23_v4  ;;  %276 = vmatprep.subr.mxu1 %v132_v7  ;;  %v241_v14 = vld [vmem:[%s412_s2] ss:$0 sm:$0xff] }
   0x9   :  { %270 = vmatpush3.msra.mxu0 %v23_v4  ;;  %277 = vmatpush3.msra.mxu1 %v132_v7  ;;  %v244_v29 = vld [vmem:[%s414_s4] ss:$0 sm:$0xff]  ;;  %p307_p3 = por %p306_p2, %p305_p1 }
   0xa   :  { %272 = vmatmul.mubr.msk.f32.vlgmr.msra.gmra.mxu0 %vm34_vm0, %v22_v5  ;;  %278 = vmatprep.subr.mxu1 %v131_v8 }
   0xb   :  { %279 = vmatpush3.msra.mxu1 %v131_v8  ;;  %p308_p4 = pnand %p307_p3, %p301_p0 }
   0xc   :  { %280 = vmatprep.subr.mxu1 %v130_v9 }
   0xd   :  { %281 = vmatpush3.msra.mxu1 %v130_v9 }
   0xe   :  { %282 = vmatprep.subr.mxu1 %v129_v10 }
   0xf   :  { %283 = vmatpush3.msra.mxu1 %v129_v10 }
  0x10   :  { %284 = vmatprep.subr.mxu1 %v128_v11 }
  0x11   :  { %285 = vmatpush3.msra.mxu1 %v128_v11 }
  0x12   :  { %286 = vmatprep.subr.mxu1 %v127_v12 }
  0x13   :  { %287 = vmatpush3.msra.mxu1 %v127_v12 }
  0x14   :  { %288 = vmatprep.subr.mxu1 %v126_v13 }
  0x15   :  { %289 = vmatpush3.msra.mxu1 %v126_v13 }
  0xca   :  { %v273_v15 = vpop.f32.mrf.mxu0 }
  0xcb   :  { %v113_v16 = vadd.f32 %v273_v15, %v241_v14 }
  0xcc   :  { %v107_v17 = vpop.f32.mrf.mxu0 }
  0xcd   :  { %v119_v18 = vmul.f32 0.70710677, %v113_v16  ;;  %v108_v19 = vadd.f32 %v241_v14, %v107_v17  ;;  %v117_v26 = vmul.f32 0.5, %v113_v16 }
  0xcf   :  { %296 = verf.f32 %v119_v18  ;;  %v118_v20 = vmul.f32 0.70710677, %v108_v19  ;;  %v116_v24 = vmul.f32 0.5, %v108_v19 }
  0xd1   :  { %298 = verf.f32 %v118_v20 }
  0xdc   :  { %v297_v21 = vpop.eup %296 }
  0xdd   :  { %v123_v23 = vadd.f32 1.0, %v297_v21 }
  0xde   :  { %v299_v22 = vpop.eup %298 }
  0xdf   :  { %v122_v25 = vadd.f32 1.0, %v299_v22  ;;  %v125_v28 = vmul.f32 %v123_v23, %v117_v26 }
  0xe1   :  { %v124_v27 = vmul.f32 %v122_v25, %v116_v24 }
  0xe3   :  { %290 = vmatprep.mubr.msk.f32.mxu1 %vm141_vm1, %v124_v27 }
  0xe4   :  { %291 = vmatmul.mubr.msk.f32.vlgmr.msra.gmra.mxu1 %vm141_vm1, %v125_v28 }
 0x1a4   :  { %v292_v30 = vpop.f32.mrf.mxu1 }
 0x1a5   :  { %v220_v31 = vadd.f32 %v292_v30, %v244_v29 }
 0x1a6   :  { %v214_v32 = vpop.f32.mrf.mxu1 }
 0x1a7   :  { %224 = vst.msk [vmem:[#allocation2 + $0x8] sm:$0xff] %vm34_vm0, %v220_v31  ;;  %v215_v33 = vadd.f32 %v244_v29, %v214_v32 }
 0x1a9   :  { %223 = vst.msk [vmem:[#allocation2] sm:$0xff] %vm34_vm0, %v215_v33 }
 0x1aa   :  { %311 = shalt.err (!%p308_p4)
}
 0x1ab   :  { %s323_s24 = smov 128   ;;  %s324_s4 = smov 8  }
 0x1ac   :  { %236 = dma.vmem_to_hbm [thread:$0]  %s231_s22, 256, %s415_s5, [#allocation3], %s323_s24, %s323_s24, %s324_s4  }
 0x1ad   :  { %320 = dma.done.wait [#allocation3], 256  }
 0x1ae   :  { %321 = vsyncadd [#allocation3], 4294967040 }
 0x1af   :  { %240 = vsyncpa [#allocation3], 1 }

</bundles_post_ra>
